<compile_context>
chip_gen: v6e
topology: v6e:2x2x1
jax: 0.10.0
libtpu: 0.0.40
codegen_flags: <defaults>
</compile_context>

<pallas_src>
import math
import functools

import jax
import jax.numpy as jnp
from jax.experimental import pallas as pl
from jax.experimental.pallas import tpu as pltpu


def _pick_tile(n, candidates=(512, 256, 128)):
    """Largest candidate tile that divides n, else the full extent (always legal)."""
    for c in candidates:
        if n % c == 0:
            return c
    return n


def _flash_body(q_ref, k_ref, v_ref, mask_ref, o_ref, m_sc, l_sc, acc_sc,
                *, scale, causal, tq, tk):
    qi = pl.program_id(1)
    ki = pl.program_id(2)

    @pl.when(ki == 0)
    def _():
        m_sc[...] = jnp.full_like(m_sc, -jnp.inf)
        l_sc[...] = jnp.zeros_like(l_sc)
        acc_sc[...] = jnp.zeros_like(acc_sc)

    def compute():
        q = q_ref[0].astype(jnp.float32)          # (tq, d)
        k = k_ref[0].astype(jnp.float32)          # (tk, d)
        s = jnp.dot(q, k.T, preferred_element_type=jnp.float32) * scale

        if causal:
            row = qi * tq + jax.lax.broadcasted_iota(jnp.int32, (tq, tk), 0)
            col = ki * tk + jax.lax.broadcasted_iota(jnp.int32, (tq, tk), 1)
            s = jnp.where(col <= row, s, jnp.float32(-1e30))
        elif mask_ref is not None:
            # mask: 1.0 == attend, 0.0 == masked out
            s = jnp.where(mask_ref[0] > 0.0, s, jnp.float32(-1e30))

        m_prev = m_sc[...]
        m_new = jnp.maximum(m_prev, jnp.max(s, axis=-1, keepdims=True))
        alpha = jnp.exp(m_prev - m_new)
        p = jnp.exp(s - m_new)
        l_sc[...] = alpha * l_sc[...] + jnp.sum(p, axis=-1, keepdims=True)
        acc_sc[...] = alpha * acc_sc[...] + jnp.dot(
            p.astype(v_ref.dtype), v_ref[0],
            preferred_element_type=jnp.float32)
        m_sc[...] = m_new

    if causal:
        # Skip KV blocks entirely above the causal diagonal (compute only).
        pl.when(ki * tk < (qi + 1) * tq)(compute)
    else:
        compute()

    @pl.when(ki == pl.num_programs(2) - 1)
    def _():
        o_ref[0] = (acc_sc[...] *
                    pl.reciprocal(l_sc[...], approx=False)).astype(o_ref.dtype)


def _causal_kernel(q_ref, k_ref, v_ref, o_ref, m_sc, l_sc, acc_sc,
                   *, scale, tq, tk):
    _flash_body(q_ref, k_ref, v_ref, None, o_ref, m_sc, l_sc, acc_sc,
                scale=scale, causal=True, tq=tq, tk=tk)


def _masked_kernel(q_ref, k_ref, v_ref, mask_ref, o_ref, m_sc, l_sc, acc_sc,
                   *, scale, tq, tk):
    _flash_body(q_ref, k_ref, v_ref, mask_ref, o_ref, m_sc, l_sc, acc_sc,
                scale=scale, causal=False, tq=tq, tk=tk)


def core_attention_forward(query_layer, key_layer, value_layer,
                           attention_mask=None):
    """Pallas implementation of CoreAttention.forward (torch>=2 SDPA branch).

    Args:
      query_layer, key_layer, value_layer: [seq, batch, heads, head_dim]
      attention_mask: optional bool [batch, 1, sq, sk], True = masked out.
    Returns:
      context_layer: [seq, batch, heads * head_dim]
    """
    sq, b, h, d = query_layer.shape
    sk = key_layer.shape[0]
    scale = 1.0 / math.sqrt(d)

    # [seq, b, h, d] -> [b, h, seq, d] -> [b*h, seq, d]
    def to_bhsd(x):
        s = x.shape
        return jnp.transpose(x, (1, 2, 0, 3)).reshape(s[1] * s[2], s[0], s[3])

    q = to_bhsd(query_layer)
    k = to_bhsd(key_layer)
    v = to_bhsd(value_layer)

    causal = attention_mask is None
    if causal and sq != sk:
        raise ValueError("attention_mask=None requires sq == sk (causal SDPA).")

    tq = _pick_tile(sq)
    tk = _pick_tile(sk)
    nq = sq // tq
    nk = sk // tk

    q_spec = pl.BlockSpec((1, tq, d), lambda g, i, j: (g, i, 0))
    k_spec = pl.BlockSpec((1, tk, d), lambda g, i, j: (g, j, 0))
    v_spec = pl.BlockSpec((1, tk, d), lambda g, i, j: (g, j, 0))
    o_spec = pl.BlockSpec((1, tq, d), lambda g, i, j: (g, i, 0))

    scratch = [pltpu.VMEM((tq, 1), jnp.float32),   # running max m
               pltpu.VMEM((tq, 1), jnp.float32),   # running sum l
               pltpu.VMEM((tq, d), jnp.float32)]   # output accumulator

    common = dict(
        out_shape=jax.ShapeDtypeStruct((b * h, sq, d), query_layer.dtype),
        compiler_params=pltpu.CompilerParams(
            dimension_semantics=("parallel", "parallel", "arbitrary")),
    )

    if causal:
        kernel = functools.partial(_causal_kernel, scale=scale, tq=tq, tk=tk)
        out = pl.pallas_call(
            kernel,
            grid_spec=pltpu.PrefetchScalarGridSpec(
                num_scalar_prefetch=0,
                grid=(b * h, nq, nk),
                in_specs=[q_spec, k_spec, v_spec],
                out_specs=o_spec,
                scratch_shapes=scratch),
            **common,
        )(q, k, v)
    else:
        # allowed = ~attention_mask (True/1.0 means attend), shape [b, sq, sk]
        allowed = jnp.logical_not(attention_mask[:, 0, :, :]).astype(jnp.float32)
        mask_spec = pl.BlockSpec((1, tq, tk), lambda g, i, j: (g // h, i, j))
        kernel = functools.partial(_masked_kernel, scale=scale, tq=tq, tk=tk)
        out = pl.pallas_call(
            kernel,
            grid_spec=pltpu.PrefetchScalarGridSpec(
                num_scalar_prefetch=0,
                grid=(b * h, nq, nk),
                in_specs=[q_spec, k_spec, v_spec, mask_spec],
                out_specs=o_spec,
                scratch_shapes=scratch),
            **common,
        )(q, k, v, allowed)

    # [b*h, sq, d] -> [b, h, sq, d] -> [sq, b, h, d] -> [sq, b, h*d]
    out = out.reshape(b, h, sq, d)
    out = jnp.transpose(out, (2, 0, 1, 3)).reshape(sq, b, h * d)
    return out


def _reference(query_layer, key_layer, value_layer):
    """Pure-JAX reference (causal SDPA, fp32 softmax) for verification."""
    sq, b, h, d = query_layer.shape
    q = jnp.transpose(query_layer, (1, 2, 0, 3)).astype(jnp.float32)
    k = jnp.transpose(key_layer, (1, 2, 0, 3)).astype(jnp.float32)
    v = jnp.transpose(value_layer, (1, 2, 0, 3)).astype(jnp.float32)
    s = jnp.einsum("bhqd,bhkd->bhqk", q, k) / math.sqrt(d)
    causal = jnp.tril(jnp.ones((sq, sq), dtype=bool))
    s = jnp.where(causal, s, -jnp.inf)
    p = jax.nn.softmax(s, axis=-1)
    o = jnp.einsum("bhqk,bhkd->bhqd", p, v)
    o = jnp.transpose(o, (2, 0, 1, 3)).reshape(sq, b, h * d)
    return o.astype(query_layer.dtype)


if __name__ == "__main__":
    # Small config: seq=8, batch=2, num_attention_heads=2, kv_channels=16
    # -> hidden_size_per_partition = 32.
    S, B, H, D = 8, 2, 2, 16
    key = jax.random.PRNGKey(0)
    kq, kk, kv = jax.random.split(key, 3)
    query_layer = jax.random.normal(kq, (S, B, H, D), dtype=jnp.float32)
    key_layer = jax.random.normal(kk, (S, B, H, D), dtype=jnp.float32)
    value_layer = jax.random.normal(kv, (S, B, H, D), dtype=jnp.float32)

    # --- causal path (attention_mask=None) ---
    out = core_attention_forward(query_layer, key_layer, value_layer,
                                 attention_mask=None)
    out = jax.block_until_ready(out)
    ref = _reference(query_layer, key_layer, value_layer)
    assert out.shape == (S, B, H * D)
    assert jnp.allclose(out, ref, atol=2e-5, rtol=2e-5), "causal mismatch"

    # --- explicit attention_mask path (mask == causal mask, True = masked out) ---
    masked_out_mask = ~jnp.tril(jnp.ones((S, S), dtype=bool))
    attn_mask = jnp.broadcast_to(masked_out_mask, (B, 1, S, S))
    out_m = core_attention_forward(query_layer, key_layer, value_layer,
                                   attention_mask=attn_mask)
    out_m = jax.block_until_ready(out_m)
    assert jnp.allclose(out_m, ref, atol=2e-5, rtol=2e-5), "masked mismatch"

    # --- larger causal case to exercise multi-block online softmax / tiling ---
    S2, B2, H2, D2 = 256, 1, 2, 64
    kq2, kk2, kv2 = jax.random.split(jax.random.PRNGKey(1), 3)
    q2 = jax.random.normal(kq2, (S2, B2, H2, D2), dtype=jnp.float32)
    k2 = jax.random.normal(kk2, (S2, B2, H2, D2), dtype=jnp.float32)
    v2 = jax.random.normal(kv2, (S2, B2, H2, D2), dtype=jnp.float32)
    out2 = jax.block_until_ready(core_attention_forward(q2, k2, v2, None))
    ref2 = _reference(q2, k2, v2)
    assert jnp.allclose(out2, ref2, atol=2e-5, rtol=2e-5), "tiled causal mismatch"

    print("KERNEL_OK")
</pallas_src>

<mosaic_0001>
module attributes {stable_mosaic.version = 11 : i64} {
  func.func @_causal_kernel(%arg0: i32, %arg1: i32, %arg2: i32, %arg3: memref<1x8x16xf32, #tpu.memory_space<vmem>>, %arg4: memref<1x8x16xf32, #tpu.memory_space<vmem>>, %arg5: memref<1x8x16xf32, #tpu.memory_space<vmem>>, %arg6: memref<1x8x16xf32, #tpu.memory_space<vmem>>, %arg7: memref<8x1xf32, #tpu.memory_space<vmem>>, %arg8: memref<8x1xf32, #tpu.memory_space<vmem>>, %arg9: memref<8x16xf32, #tpu.memory_space<vmem>>) attributes {dimension_semantics = [#tpu.dimension_semantics<parallel>, #tpu.dimension_semantics<parallel>, #tpu.dimension_semantics<arbitrary>], iteration_bounds = array<i64: 4, 1, 1>, scalar_prefetch = 0 : i64, scratch_operands = 3 : i64, tpu.core_type = #tpu.core_type<tc>, window_params = [{transform_indices = @transform_0, window_bounds = array<i64: 1, 8, 16>}, {transform_indices = @transform_1, window_bounds = array<i64: 1, 8, 16>}, {transform_indices = @transform_2, window_bounds = array<i64: 1, 8, 16>}, {transform_indices = @transform_3, window_bounds = array<i64: 1, 8, 16>}]} {
    %c0_i32 = arith.constant 0 : i32
    %0 = arith.cmpi eq, %arg2, %c0_i32 : i32
    %1 = arith.extui %0 : i1 to i32
    %c0_i32_0 = arith.constant 0 : i32
    %2 = arith.cmpi ne, %1, %c0_i32_0 : i32
    scf.if %2 {
      %cst = arith.constant 0xFF800000 : f32
      %12 = vector.broadcast %cst : f32 to vector<8x1xf32>
      %c0 = arith.constant 0 : index
      %c0_5 = arith.constant 0 : index
      %13 = vector.load %arg7[%c0, %c0_5] : memref<8x1xf32, #tpu.memory_space<vmem>>, vector<8x1xf32>
      tpu.vector_store %arg7[%c0, %c0_5], %12 {strides = array<i32>} : memref<8x1xf32, #tpu.memory_space<vmem>>, vector<8x1xf32>,
      %cst_6 = arith.constant 0.000000e+00 : f32
      %14 = vector.broadcast %cst_6 : f32 to vector<8x1xf32>
      %c0_7 = arith.constant 0 : index
      %c0_8 = arith.constant 0 : index
      %15 = vector.load %arg8[%c0_7, %c0_8] : memref<8x1xf32, #tpu.memory_space<vmem>>, vector<8x1xf32>
      tpu.vector_store %arg8[%c0_7, %c0_8], %14 {strides = array<i32>} : memref<8x1xf32, #tpu.memory_space<vmem>>, vector<8x1xf32>,
      %cst_9 = arith.constant 0.000000e+00 : f32
      %16 = vector.broadcast %cst_9 : f32 to vector<8x16xf32>
      %c0_10 = arith.constant 0 : index
      %c0_11 = arith.constant 0 : index
      %17 = vector.load %arg9[%c0_10, %c0_11] : memref<8x16xf32, #tpu.memory_space<vmem>>, vector<8x16xf32>
      tpu.vector_store %arg9[%c0_10, %c0_11], %16 {strides = array<i32>} : memref<8x16xf32, #tpu.memory_space<vmem>>, vector<8x16xf32>,
    } else {
    }
    %c8_i32 = arith.constant 8 : i32
    %3 = arith.muli %arg2, %c8_i32 : i32
    %c1_i32 = arith.constant 1 : i32
    %4 = arith.addi %arg1, %c1_i32 : i32
    %c8_i32_1 = arith.constant 8 : i32
    %5 = arith.muli %4, %c8_i32_1 : i32
    %6 = arith.cmpi slt, %3, %5 : i32
    %7 = arith.extui %6 : i1 to i32
    %c0_i32_2 = arith.constant 0 : i32
    %8 = arith.cmpi ne, %7, %c0_i32_2 : i32
    scf.if %8 {
      %c0 = arith.constant 0 : index
      %c0_5 = arith.constant 0 : index
      %c0_6 = arith.constant 0 : index
      %12 = vector.load %arg3[%c0, %c0_5, %c0_6] : memref<1x8x16xf32, #tpu.memory_space<vmem>>, vector<1x8x16xf32>
      %13 = vector.shape_cast %12 : vector<1x8x16xf32> to vector<8x16xf32>
      %c0_7 = arith.constant 0 : index
      %c0_8 = arith.constant 0 : index
      %c0_9 = arith.constant 0 : index
      %14 = vector.load %arg4[%c0_7, %c0_8, %c0_9] : memref<1x8x16xf32, #tpu.memory_space<vmem>>, vector<1x8x16xf32>
      %15 = vector.shape_cast %14 : vector<1x8x16xf32> to vector<8x16xf32>
      %16 = tpu.transpose %15, [1, 0] : vector<8x16xf32> -> vector<16x8xf32>
      %cst = arith.constant dense<0.000000e+00> : vector<8x8xf32>
      %17 = tpu.matmul %13, %16, %cst {dimension_numbers = #tpu.dot_dimension_numbers<[1], [0], [0], [1], [0, 0, 1, 1], [], []>} : vector<8x16xf32>, vector<16x8xf32>, vector<8x8xf32> -> vector<8x8xf32>
      %cst_10 = arith.constant 2.500000e-01 : f32
      %18 = vector.broadcast %cst_10 : f32 to vector<8x8xf32>
      %19 = arith.mulf %17, %18 : vector<8x8xf32>
      %c8_i32_11 = arith.constant 8 : i32
      %20 = arith.muli %arg1, %c8_i32_11 : i32
      %21 = tpu.iota {dimensions = array<i32: 0>} : vector<8x8xi32>
      %22 = vector.broadcast %20 : i32 to vector<8x8xi32>
      %23 = arith.addi %22, %21 : vector<8x8xi32>
      %c8_i32_12 = arith.constant 8 : i32
      %24 = arith.muli %arg2, %c8_i32_12 : i32
      %25 = tpu.iota {dimensions = array<i32: 1>} : vector<8x8xi32>
      %26 = vector.broadcast %24 : i32 to vector<8x8xi32>
      %27 = arith.addi %26, %25 : vector<8x8xi32>
      %28 = arith.cmpi sle, %27, %23 : vector<8x8xi32>
      %cst_13 = arith.constant -1.000000e+30 : f32
      %29 = vector.broadcast %cst_13 : f32 to vector<8x8xf32>
      %30 = arith.select %28, %19, %29 : vector<8x8xi1>, vector<8x8xf32>
      %c0_14 = arith.constant 0 : index
      %c0_15 = arith.constant 0 : index
      %31 = vector.load %arg7[%c0_14, %c0_15] : memref<8x1xf32, #tpu.memory_space<vmem>>, vector<8x1xf32>
      %cst_16 = arith.constant dense<0xFF800000> : vector<8xf32>
      %32 = vector.multi_reduction <maximumf>, %30, %cst_16 [1] : vector<8x8xf32> to vector<8xf32>
      %33 = vector.shape_cast %32 : vector<8xf32> to vector<8x1xf32>
      %34 = arith.maximumf %31, %33 : vector<8x1xf32>
      %35 = arith.subf %31, %34 : vector<8x1xf32>
      %36 = math.exp %35 : vector<8x1xf32>
      %37 = vector.broadcast %34 : vector<8x1xf32> to vector<8x8xf32>
      %38 = arith.subf %30, %37 : vector<8x8xf32>
      %39 = math.exp %38 : vector<8x8xf32>
      %c0_17 = arith.constant 0 : index
      %c0_18 = arith.constant 0 : index
      %40 = vector.load %arg8[%c0_17, %c0_18] : memref<8x1xf32, #tpu.memory_space<vmem>>, vector<8x1xf32>
      %41 = arith.mulf %36, %40 : vector<8x1xf32>
      %cst_19 = arith.constant dense<0.000000e+00> : vector<8xf32>
      %42 = vector.multi_reduction <add>, %39, %cst_19 [1] : vector<8x8xf32> to vector<8xf32>
      %43 = vector.shape_cast %42 : vector<8xf32> to vector<8x1xf32>
      %44 = arith.addf %41, %43 : vector<8x1xf32>
      %c0_20 = arith.constant 0 : index
      %c0_21 = arith.constant 0 : index
      %45 = vector.load %arg8[%c0_20, %c0_21] : memref<8x1xf32, #tpu.memory_space<vmem>>, vector<8x1xf32>
      tpu.vector_store %arg8[%c0_20, %c0_21], %44 {strides = array<i32>} : memref<8x1xf32, #tpu.memory_space<vmem>>, vector<8x1xf32>,
      %c0_22 = arith.constant 0 : index
      %c0_23 = arith.constant 0 : index
      %46 = vector.load %arg9[%c0_22, %c0_23] : memref<8x16xf32, #tpu.memory_space<vmem>>, vector<8x16xf32>
      %47 = vector.broadcast %36 : vector<8x1xf32> to vector<8x16xf32>
      %48 = arith.mulf %47, %46 : vector<8x16xf32>
      %c0_24 = arith.constant 0 : index
      %c0_25 = arith.constant 0 : index
      %c0_26 = arith.constant 0 : index
      %49 = vector.load %arg5[%c0_24, %c0_25, %c0_26] : memref<1x8x16xf32, #tpu.memory_space<vmem>>, vector<1x8x16xf32>
      %50 = vector.shape_cast %49 : vector<1x8x16xf32> to vector<8x16xf32>
      %cst_27 = arith.constant dense<0.000000e+00> : vector<8x16xf32>
      %51 = tpu.matmul %39, %50, %cst_27 {dimension_numbers = #tpu.dot_dimension_numbers<[1], [0], [0], [1], [0, 0, 1, 1], [], []>} : vector<8x8xf32>, vector<8x16xf32>, vector<8x16xf32> -> vector<8x16xf32>
      %52 = arith.addf %48, %51 : vector<8x16xf32>
      %c0_28 = arith.constant 0 : index
      %c0_29 = arith.constant 0 : index
      %53 = vector.load %arg9[%c0_28, %c0_29] : memref<8x16xf32, #tpu.memory_space<vmem>>, vector<8x16xf32>
      tpu.vector_store %arg9[%c0_28, %c0_29], %52 {strides = array<i32>} : memref<8x16xf32, #tpu.memory_space<vmem>>, vector<8x16xf32>,
      %c0_30 = arith.constant 0 : index
      %c0_31 = arith.constant 0 : index
      %54 = vector.load %arg7[%c0_30, %c0_31] : memref<8x1xf32, #tpu.memory_space<vmem>>, vector<8x1xf32>
      tpu.vector_store %arg7[%c0_30, %c0_31], %34 {strides = array<i32>} : memref<8x1xf32, #tpu.memory_space<vmem>>, vector<8x1xf32>,
    } else {
    }
    %c0_i32_3 = arith.constant 0 : i32
    %9 = arith.cmpi eq, %arg2, %c0_i32_3 : i32
    %10 = arith.extui %9 : i1 to i32
    %c0_i32_4 = arith.constant 0 : i32
    %11 = arith.cmpi ne, %10, %c0_i32_4 : i32
    scf.if %11 {
      %c0 = arith.constant 0 : index
      %c0_5 = arith.constant 0 : index
      %12 = vector.load %arg9[%c0, %c0_5] : memref<8x16xf32, #tpu.memory_space<vmem>>, vector<8x16xf32>
      %c0_6 = arith.constant 0 : index
      %c0_7 = arith.constant 0 : index
      %13 = vector.load %arg8[%c0_6, %c0_7] : memref<8x1xf32, #tpu.memory_space<vmem>>, vector<8x1xf32>
      %14 = tpu.reciprocal %13 : vector<8x1xf32> -> vector<8x1xf32>
      %15 = vector.broadcast %14 : vector<8x1xf32> to vector<8x16xf32>
      %16 = arith.mulf %12, %15 : vector<8x16xf32>
      %c0_8 = arith.constant 0 : index
      %c0_9 = arith.constant 0 : index
      %c0_10 = arith.constant 0 : index
      %17 = vector.load %arg6[%c0_8, %c0_9, %c0_10] : memref<1x8x16xf32, #tpu.memory_space<vmem>>, vector<1x8x16xf32>
      %18 = vector.shape_cast %17 : vector<1x8x16xf32> to vector<8x16xf32>
      %19 = vector.shape_cast %16 : vector<8x16xf32> to vector<1x8x16xf32>
      tpu.vector_store %arg6[%c0_8, %c0_9, %c0_10], %19 {strides = array<i32>} : memref<1x8x16xf32, #tpu.memory_space<vmem>>, vector<1x8x16xf32>,
    } else {
    }
    return
  }
  func.func @transform_0(%arg0: i32, %arg1: i32, %arg2: i32) -> (i32, i32, i32) {
    %c0_i32 = arith.constant 0 : i32
    %c0_i32_0 = arith.constant 0 : i32
    return %arg0, %arg1, %c0_i32 : i32, i32, i32
  }
  func.func @transform_1(%arg0: i32, %arg1: i32, %arg2: i32) -> (i32, i32, i32) {
    %c0_i32 = arith.constant 0 : i32
    %c0_i32_0 = arith.constant 0 : i32
    return %arg0, %arg2, %c0_i32 : i32, i32, i32
  }
  func.func @transform_2(%arg0: i32, %arg1: i32, %arg2: i32) -> (i32, i32, i32) {
    %c0_i32 = arith.constant 0 : i32
    %c0_i32_0 = arith.constant 0 : i32
    return %arg0, %arg2, %c0_i32 : i32, i32, i32
  }
  func.func @transform_3(%arg0: i32, %arg1: i32, %arg2: i32) -> (i32, i32, i32) {
    %c0_i32 = arith.constant 0 : i32
    %c0_i32_0 = arith.constant 0 : i32
    return %arg0, %arg1, %c0_i32 : i32, i32, i32
  }
}

</mosaic_0001>

<bundles_post_ra>
// kernel: tpu_custom_call.1
= control target key start
LH: loop header
LB: loop body
LE: loop exit
PB: predicated region body
PF: predicated region fallthrough
CT: control target
= control target key end

     0   :  { %s1186_s0 = inlined_call_operand.hbm [shape: f32[4,8,16], index: 0, kind: input, shape index: {}]   ;;  %s1187_s1 = inlined_call_operand.hbm [shape: f32[4,8,16], index: 1, kind: input, shape index: {}]   ;;  %s1188_s2 = inlined_call_operand.hbm [shape: f32[4,8,16], index: 2, kind: input, shape index: {}]   ;;  %s1189_s3 = inlined_call_operand.hbm [shape: f32[4,8,16], index: 3, kind: output, shape index: {}]  }
   0x1   :  { %1193 = sst [smem:[#allocation17_spill]] %s1187_s1 }
   0x2   :  { %8 = vsyncpa [#allocation6], 0 }
   0x3   :  { %10 = vsyncpa [#allocation6 + $0x1], 0 }
   0x4   :  { %11 = vsyncpa [#allocation9], 0 }
   0x5   :  { %13 = vsyncpa [#allocation9 + $0x1], 0 }
   0x6   :  { %14 = vsyncpa [#allocation7], 0 }
   0x7   :  { %16 = vsyncpa [#allocation7 + $0x1], 0  ;;  %s978_s12 = smov 0   ;;  %s980_s13 = smov 0  }
   0x8   :  { %s982_s14 = smov 0   ;;  %s984_s15 = smov 0  }
   0x9   :  { %s986_s16 = smov 0   ;;  %s988_s17 = smov 0  }
   0xa LB: > { %1194 = sst [smem:[#allocation15_spill]] %s944_s16  ;;  %s1009_s18 = sadd.s32 4294967295, %s948_s17   ;;  %s948_s17 = sphi %s988_s17, %s22_s17   ;;  %s944_s16 = sphi %s986_s16, %s1205_s16   ;;  %s940_s15 = sphi %s984_s15, %s1204_s15   ;;  %s936_s14 = sphi %s982_s14, %s1208_s14   ;;  %s932_s13 = sphi %s980_s13, %s1207_s13   ;;  %s928_s12 = sphi %s978_s12, %s1206_s12  }
   0xb   : > { %s661_s19 = sadd.s32 4294967294, %s948_s17   ;;  %s41_s20 = sadd.s32 1, %s944_s16 }
   0xc   : > { %s50_s21 = sadd.s32 1, %s936_s14  ;;  %p43_p0 = scmp.ge.s32.totalorder %s41_s20, 4 }
   0xd   : > { %p57_p1 = scmp.ne.s32.totalorder %s936_s14, %s932_s13  ;;  %p58_p2 = scmp.eq.s32.totalorder %s948_s17, 0 }
   0xe   : > { %p63_p3 = scmp.ne.s32.totalorder %s932_s13, %s928_s12  ;;  %s1210_s20 = smov (%p43_p0, %s41_s20), 0 }
   0xf   : > { %1195 = sst [smem:[#allocation16_spill]] %s1210_s20  ;;  %p1021_p4 = por %p58_p2, %p57_p1 }
  0x10   : > { %p64_p5 = scmp.eq.s32.totalorder %s1009_s18, 0  ;;  %s45_s23 = ssub.s32 %s944_s16, %s1210_s20 }
  0x11   : > { %p145_p6 = scmp.eq.s32.totalorder %s1009_s18, 3  ;;  %p48_p7 = scmp.eq.s32.totalorder %s45_s23, 0 }
  0x12   : > { %p1029_p8 = por %p64_p5, %p63_p3  ;;  %p151_p10 = scmp.eq.s32.totalorder %s661_s19, 3 }
  0x13   : > { %p1033_p9 = por %p145_p6, %p57_p1  ;;  %p718_p12 = scmp.lt.s32.totalorder %s948_s17, 4 }
  0x14   : > { %s1038_s26 = scalar_select %p48_p7, %s936_s14, %s50_s21  }
  0x15   : > { %p1040_p11 = por %p151_p10, %p63_p3  ;;  %s1190_s28 = sand.u32 1, %s936_s14  }
  0x16   : > { %s1048_s29 = sshll.u32 %s1190_s28, 3  ;;  %s1051_s30 = sshll.u32 %s944_s16, 7 }
  0x17   : > { %p1055_p13 = pnand %p718_p12, %p1021_p4  ;;  %s190_s5 = sand.u32 1, %s948_s17  }
  0x18   : > { %s1201_s1 = sld [smem:[#allocation17_spill]]  ;;  %s194_s9 = scalar_lea.vmem [#allocation8], %s1048_s29 }
  0x19   : > { %s202_s10 = sshll.u32 %s194_s9, 4  ;;  %p670_p0 = scmp.ge.s32.totalorder %s948_s17, 1  ;;  %s203_s10 = int_to_ptr.vmem [resolvable:$true] %s202_s10 }
  0x1a   : > { %p226_p1 = scmp.lt.s32.totalorder %s948_s17, 5  ;;  %s1067_s11 = scalar_lea.sflag [#allocation9], %s190_s5 }
  0x1b   : > { %p782_p2 = pneg %p1055_p13  ;;  %s793_s19 = scalar_lea.vmem %s203_s10, 128 }
  0x1c   : > { %p794_p3 = scmp.ne.s32.totalorder %s203_s10, %s793_s19  ;;  %s950_s21 = smov [#allocation8]  }
  0x1d   : > { %s798_s22 = sshll.u32 %s950_s21, 4  ;;  %s799_s22 = int_to_ptr.vmem [resolvable:$false] %s798_s22 }
  0x1e   : > { %s200_s8 = scalar_lea.hbm %s1201_s1, %s1051_s30  ;;  %p796_p4 = pnand %p794_p3, %p782_p2 }
  0x1f   : > { %s800_s23 = scalar_lea.vmem %s799_s22, 256  ;;  %p801_p6 = scmp.lt.s32.totalorder %s203_s10, %s799_s22 }
  0x20   : > { %p797_p5 = pneg %p796_p4  ;;  %p802_p7 = scmp.lt.s32.totalorder %s800_s23, %s793_s19 }
  0x22   : > { %p803_p10 = por %p802_p7, %p801_p6 }
  0x24   : > { %p804_p12 = pnand %p803_p10, %p797_p5 }
  0x26   : > { %807 = shalt.err (!%p804_p12)
}
  0x27   : > { %710 = dma.hbm_to_vmem [thread:$0]  (!%p1055_p13), %s200_s8, 128, %s203_s10, %s1067_s11  }
  0x28   : > { %p1081_p3 = pnand %p670_p0, %p226_p1  ;;  %s181_s9 = scalar_lea.hbm %s1186_s0, %s1051_s30 }
  0x29   : > { %s175_s19 = scalar_lea.vmem [#allocation5], %s1048_s29  ;;  %s219_s28 = scalar_lea.hbm %s1188_s2, %s1051_s30 }
  0x2a   : > { %s183_s21 = sshll.u32 %s175_s19, 4  ;;  %s1203_s1 = sand.u32 1, %s936_s14   ;;  %s184_s21 = int_to_ptr.vmem [resolvable:$true] %s183_s21 }
  0x2b   : > { %s172_s20 = scalar_lea.sflag [#allocation6], %s1203_s1  ;;  %s821_s8 = scalar_lea.vmem %s184_s21, 128 }
  0x2c   : > { %p822_p4 = scmp.ne.s32.totalorder %s184_s21, %s821_s8  ;;  %s951_s10 = smov [#allocation5]  }
  0x2d   : > { %s826_s16 = sshll.u32 %s951_s10, 4  ;;  %s827_s16 = int_to_ptr.vmem [resolvable:$false] %s826_s16 }
  0x2e   : > { %p824_p0 = pnand %p822_p4, %p782_p2  ;;  %s828_s6 = scalar_lea.vmem %s827_s16, 256 }
  0x2f   : > { %p829_p5 = scmp.lt.s32.totalorder %s184_s21, %s827_s16  ;;  %p830_p6 = scmp.lt.s32.totalorder %s828_s6, %s821_s8 }
  0x30   : > { %p825_p1 = pneg %p824_p0 }
  0x31   : > { %p831_p7 = por %p830_p6, %p829_p5 }
  0x33   : > { %p832_p10 = pnand %p831_p7, %p825_p1 }
  0x35   : > { %835 = shalt.err (!%p832_p10)
}
  0x36   : > { %707 = dma.hbm_to_vmem [thread:$0]  (!%p1055_p13), %s181_s9, 128, %s184_s21, %s172_s20  }
  0x37   : > { %s213_s1 = scalar_lea.vmem [#allocation10], %s1048_s29  ;;  %s952_s22 = smov [#allocation10]  }
  0x38   : > { %s221_s7 = sshll.u32 %s213_s1, 4  ;;  %s854_s16 = sshll.u32 %s952_s22, 4  ;;  %s222_s7 = int_to_ptr.vmem [resolvable:$true] %s221_s7  ;;  %s855_s16 = int_to_ptr.vmem [resolvable:$false] %s854_s16 }
  0x39   : > { %s849_s19 = scalar_lea.vmem %s222_s7, 128  ;;  %s856_s23 = scalar_lea.vmem %s855_s16, 256 }
  0x3a   : > { %p850_p12 = scmp.ne.s32.totalorder %s222_s7, %s849_s19  ;;  %p857_p1 = scmp.lt.s32.totalorder %s222_s7, %s855_s16 }
  0x3b   : > { %p858_p5 = scmp.lt.s32.totalorder %s856_s23, %s849_s19 }
  0x3c   : > { %p852_p4 = pnand %p850_p12, %p782_p2 }
  0x3d   : > { %p859_p6 = por %p858_p5, %p857_p1 }
  0x3e   : > { %p853_p0 = pneg %p852_p4 }
  0x40   : > { %p860_p7 = pnand %p859_p6, %p853_p0 }
  0x42   : > { %863 = shalt.err (!%p860_p7)
}
  0x43   : > { %713 = dma.hbm_to_vmem [thread:$0]  (!%p1055_p13), %s219_s28, 128, %s222_s7, %s1067_s11  }
  0x44   : > { %230 = sbr.rel (%p1081_p3) target bundleno = 864 (0x360), region = 32  ;;  %s1116_s9 = sand.u32 (!%p1081_p3), 1, %s932_s13  }
  0x45   : > { %s1119_s21 = sshll.u32 (!%p1081_p3), %s1116_s9, 3  ;;  %s233_s4 = scalar_lea.sflag (!%p1081_p3), [#allocation6], %s1116_s9 }
  0x46   : > { %s236_s8 = scalar_lea.vmem (!%p1081_p3), [#allocation5], %s1119_s21 }
  0x49   : > { %915 = dma.done.wait (%p1029_p8), %s233_s4, 128  }
  0x4a   : > { %917 = vsyncadd (%p1029_p8), %s233_s4, 4294967168  ;;  %s241_s28 = sand.u32 1, %s1009_s18   ;;  %s245_s11 = scalar_lea.vmem [#allocation8], %s1119_s21 }
  0x4b   : > { %s242_s30 = scalar_lea.sflag [#allocation9], %s241_s28 }
  0x4c   : > { %919 = dma.done.wait (%p1029_p8), %s242_s30, 256  }
  0x4d   : > { %921 = vsyncadd (%p1029_p8), %s242_s30, 4294967040  ;;  %vm294_vm0 = vcmask 130048   ;;  %v953_v0 = vmov 0.0   ;;  %vm954_vm1 = vmmov 0   ;;  %v304_v1 = vld [vmem:[%s245_s11] sm:$0xff]  ;;  %v303_v2 = vld [vmem:[%s236_s8] sm:$0xff]  ;;  %v384_v4 = vlaneseq }
  0x4e   : > { %686 = vmatprep.subr.mxu0 %v953_v0  ;;  %295 = vst.msk [vmem:[#allocation4] sm:$0xff] %vm294_vm0, %v953_v0  ;;  %688 = vmatprep.mubr.msk.f32.mxu0 %vm954_vm1, %v953_v0  ;;  %vm291_vm2 = vcmask 7168   ;;  %v955_v3 = vmov -inf   ;;  %vm395_vm4 = vcmask 64512   ;;  %v956_v12 = vmov 0   ;;  %s254_s18 = scalar_lea.vmem [#allocation10], %s1119_s21 }
  0x4f   : > { %691 = vmatprep.subr.mxu1 %v953_v0  ;;  %693 = vmatprep.mubr.msk.f32.mxu1 %vm954_vm1, %v953_v0  ;;  %292 = vst.msk [vmem:[#allocation2] sm:$0xff] %vm291_vm2, %v955_v3  ;;  %293 = vst.msk [vmem:[#allocation3] sm:$0xff] %vm291_vm2, %v953_v0  ;;  %v385_v5 = vshrl.u32 %v384_v4, 7  ;;  %v389_v6 = vand.u32 127, %v384_v4  ;;  %v426_v17 = vld [vmem:[%s254_s18] sm:$0xff]  ;;  %s679_s24 = sshll.u32 %s940_s15, 7 }
  0x50   : > { %687 = vmatpush3.xpose.msk.msra.mxu0 %vm294_vm0, %v304_v1  ;;  %772 = vset.pattern.permute.xlu0 %v956_v12  ;;  %s286_s5 = scalar_lea.vmem [#allocation11], %s1119_s21  ;;  %s530_s7 = scalar_lea.hbm %s1189_s3, %s679_s24 }
  0x51   : > { %vm392_vm3 = vcmp.le.s32.totalorder %v389_v6, %v385_v5  ;;  %773 = vset.pattern.permute.xlu1 %v956_v12  ;;  %692 = vmatpush3.msra.mxu1 %v426_v17  ;;  %s532_s10 = sshll.u32 %s286_s5, 4  ;;  %s518_s19 = scalar_lea.sflag [#allocation7], %s1116_s9  ;;  %s533_s10 = int_to_ptr.vmem [resolvable:$true] %s532_s10 }
  0x52   : > { %s864_s22 = scalar_lea.vmem %s533_s10, 128  ;;  %s957_s16 = smov [#allocation11]  }
  0x53   : > { %689 = vmatmul.mubr.msk.f32.vlgmr.msra.gmra.mxu0 %vm294_vm0, %v303_v2  ;;  %p865_p8 = scmp.ne.s32.totalorder %s533_s10, %s864_s22  ;;  %s868_s15 = sshll.u32 %s957_s16, 4  ;;  %s869_s15 = int_to_ptr.vmem [resolvable:$false] %s868_s15 }
  0x54   : > { %s870_s23 = scalar_lea.vmem %s869_s15, 256  ;;  %p871_p3 = scmp.lt.s32.totalorder %s533_s10, %s869_s15 }
  0x55   : > { %v419_v31 = vld [vmem:[#allocation4] sm:$0xff]  ;;  %p866_p13 = pnand %p865_p8, %p1033_p9  ;;  %p872_p10 = scmp.lt.s32.totalorder %s870_s23, %s864_s22 }
  0x56   : > { %v394_v13 = vld [vmem:[#allocation2] sm:$0xff]  ;;  %v411_v25 = vld [vmem:[#allocation3] sm:$0xff] }
  0x57   : > { %p867_p2 = pneg %p866_p13  ;;  %p873_p12 = por %p872_p10, %p871_p3 }
  0x59   : > { %p874_p4 = pnand %p873_p12, %p867_p2 }
 0x113   : > { %v378_v7 = vpop.f32.mrf.mxu0 }
 0x114   : > { %v382_v8 = vmul.f32 0.25, %v378_v7 }
 0x115   : > { %v690_v9 = vpop.f32.mrf.mxu0 }
 0x116   : > { %v393_v10 = vsel %vm392_vm3, %v382_v8, -1e+30 }
 0x117   : > { %v396_v11 = vsel %vm395_vm4, %v393_v10, -inf }
 0x118   : > { %397 = vmax.xlane.f32.xlu0 %v396_v11 }
 0x1a1   : > { %v398_v14 = vpop.xlane.xlu0 %397 }
 0x1a2   : > { %v399_v15 = vmax.f32 %v394_v13, %v398_v14 }
 0x1a4   : > { %v400_v16 = vsub.f32 %v394_v13, %v399_v15  ;;  %502 = vst.msk [vmem:[#allocation2] sm:$0xff] %vm291_vm2, %v399_v15  ;;  %405 = vperm.xlu0 %772, %v399_v15  }
 0x1a6   : > { %v401_v22 = vmul.f32 1.442695, %v400_v16 }
 0x21f   : > { %v406_v18 = vpop.permute.xlu0 %405 }
 0x220   : > { %v408_v19 = vsub.f32 %v393_v10, %v406_v18 }
 0x222   : > { %v409_v20 = vmul.f32 1.442695, %v408_v19 }
 0x224   : > { %774 = vpow2.f32 %v409_v20 }
 0x225   : > { %776 = vpow2.f32 %v401_v22 }
 0x231   : > { %v775_v21 = vpop.eup %774 }
 0x232   : > { %694 = vmatmul.mubr.msk.f32.vlgmr.msra.gmra.mxu1 %vm395_vm4, %v775_v21  ;;  %v413_v23 = vsel %vm395_vm4, %v775_v21, 0.0  ;;  %v777_v24 = vpop.eup %776 }
 0x233   : > { %414 = vadd.xlane.f32.xlu1 %v413_v23  ;;  %v412_v26 = vmul.f32 %v777_v24, %v411_v25 }
 0x244   : > { %422 = vperm.xlu1 %773, %v777_v24  }
 0x2bc   : > { %v415_v27 = vpop.xlane.xlu1 %414 }
 0x2bd   : > { %v416_v28 = vadd.f32 %v415_v27, %v412_v26 }
 0x2bf   : > { %418 = vst.msk [vmem:[#allocation3] sm:$0xff] %vm291_vm2, %v416_v28 }
 0x2c0   : > { %v423_v32 = vpop.permute.xlu1 %422 }
 0x2c1   : > { %v425_v33 = vmul.f32 %v423_v32, %v419_v31 }
 0x2c6   : > { %v507_v29 = vld [vmem:[#allocation3] sm:$0xff] }
 0x2c7   : > { %778 = vrcp.f32 %v507_v29 }
 0x2d4   : > { %v779_v30 = vpop.eup %778 }
 0x2d5   : > { %511 = vperm.xlu1 %773, %v779_v30  }
 0x2f2   : > { %v496_v34 = vpop.f32.mrf.mxu1 }
 0x2f3   : > { %v500_v35 = vadd.f32 %v496_v34, %v425_v33 }
 0x2f4   : > { %v695_v36 = vpop.f32.mrf.mxu1 }
 0x2f5   : > { %501 = vst.msk [vmem:[#allocation4] sm:$0xff] %vm294_vm0, %v500_v35 }
 0x2fc   : > { %v506_v37 = vld [vmem:[#allocation4] sm:$0xff] }
 0x350   : > { %v512_v38 = vpop.permute.xlu1 %511 }
 0x351   : > { %v514_v39 = vmul.f32 %v512_v38, %v506_v37 }
 0x353   : > { %516 = vst.msk [vmem:[%s286_s5] sm:$0xff] %vm294_vm0, %v514_v39 }
 0x354   : > { %877 = shalt.err (!%p874_p4)
}
 0x355   : > { %s878_s20 = scalar_lea.hbm %s530_s7, 128  ;;  %s882_s21 = scalar_lea.hbm %s1189_s3, 512 }
 0x356   : > { %p879_p0 = scmp.ne.s32.totalorder %s530_s7, %s878_s20  ;;  %p883_p6 = scmp.lt.s32.totalorder %s530_s7, %s1189_s3 }
 0x357   : > { %p884_p7 = scmp.lt.s32.totalorder %s882_s21, %s878_s20 }
 0x358   : > { %p880_p1 = pnand %p879_p0, %p1033_p9 }
 0x359   : > { %p885_p8 = por %p884_p7, %p883_p6 }
 0x35a   : > { %p881_p5 = pneg %p880_p1 }
 0x35c   : > { %p886_p13 = pnand %p885_p8, %p881_p5 }
 0x35e   : > { %889 = shalt.err (!%p886_p13)
}
 0x35f   : > { %702 = dma.vmem_to_hbm [thread:$0]  (%p1033_p9), %s533_s10, 128, %s530_s7, %s518_s19  }
 0x360 PF: > { %p719_p2 = scmp.ge.s32.totalorder %s948_s17, 2  ;;  %s544_s28 = sand.u32 1, %s928_s12  }
 0x361   : > { %s545_s30 = scalar_lea.sflag [#allocation7], %s544_s28 }
 0x362   : > { %p715_p3 = pnand %p719_p2, %p1040_p11 }
 0x364   : > { %p716_p10 = pneg %p715_p3 }
 0x366   : > { %923 = dma.done.wait (%p716_p10), %s545_s30, 128  }
 0x367   : > { %925 = vsyncadd (%p716_p10), %s545_s30, 4294967168  ;;  %s22_s17 = sadd.s32 1, %s948_s17   ;;  %s1204_s15 = sld [smem:[#allocation15_spill]] }
 0x368   : > { %p19_p12 = scmp.ge.s32.totalorder %s22_s17, 6   ;;  %s1205_s16 = sld [smem:[#allocation16_spill]] }
 0x369   : > { %s1206_s12 = smov %s932_s13  ;;  %s1207_s13 = smov %s936_s14 }
 0x36a   : > { %s1208_s14 = smov %s1038_s26  ;;  %21 = sbr.rel (!%p19_p12) target bundleno = 10 (0xa), region = 113 }
 0x36f   :  { %550 = vsyncpa [#allocation6], 1 }
 0x370   :  { %552 = vsyncpa [#allocation6 + $0x1], 1 }
 0x371   :  { %553 = vsyncpa [#allocation9], 1 }
 0x372   :  { %555 = vsyncpa [#allocation9 + $0x1], 1 }
 0x373   :  { %556 = vsyncpa [#allocation7], 1 }
 0x374   :  { %558 = vsyncpa [#allocation7 + $0x1], 1 }

</bundles_post_ra>
